<compile_context>
chip_gen: v7x
topology: tpu7x:2x2x1
jax: 0.10.0
libtpu: 0.0.40
codegen_flags: <defaults>
</compile_context>

<pallas_src>
import functools

import jax
import jax.numpy as jnp
from jax.experimental import pallas as pl
from jax.experimental.pallas import tpu as pltpu

EPS = 1e-5


# ---------------------------------------------------------------------------
# Kernel
# ---------------------------------------------------------------------------
def _channel_totals(vec, W, C):
    """Per-channel totals of a (1, W*C) lane vector.

    Lane j = w*C + c holds a partial sum for channel c at width position w.
    The result holds, in every lane j, the total over all w for channel
    j % C, i.e. per-channel sums broadcast back in the interleaved (w, c)
    lane pattern.  Exact f32 adds + lane rolls (XLU slot, nearly free).
    """
    WC = W * C
    if W & (W - 1) == 0:                      # power-of-two W: log2(W) rolls
        shift = C
        while shift < WC:
            vec = vec + pltpu.roll(vec, shift=shift, axis=1)
            shift *= 2
        return vec
    out = vec                                  # general W: W-1 rolls
    for k in range(1, W):
        out = out + pltpu.roll(vec, shift=k * C, axis=1)
    return out


def _conv_bn_relu(x2d, not_first, not_last, bw, gamma, beta, W, C):
    """One ConvBNReLU block on a lane-dense (NH, W*C) slab.

    x2d       : (NH, WC) activations.
    not_first : (NH, 1) bool, False on rows with h == 0   (no row above).
    not_last  : (NH, 1) bool, False on rows with h == H-1 (no row below).
    bw        : (3*WC, WC) stacked banded conv weights [kh=0; kh=1; kh=2].
    gamma, beta : (1, WC) BN affine params tiled across W.
    """
    NH, WC = x2d.shape
    inv_count = 1.0 / (NH * W)                 # 1 / (N*H*W), static

    # H-direction +/-1 taps: circular sublane rolls (pltpu.roll == jnp.roll
    # semantics) + boundary masks that zero the rows wrapping across images,
    # reproducing SAME zero padding in H.  No (NH,NH) shift matmuls.
    x_prev = jnp.where(not_first, pltpu.roll(x2d, shift=1, axis=0), 0.0)
    x_next = jnp.where(not_last, pltpu.roll(x2d, shift=NH - 1, axis=0), 0.0)

    # All three kh taps + all W taps + the Cin->Cout contraction in a single
    # lane-dense MXU matmul with K = 3*WC.  Conv bias intentionally omitted:
    # it is cancelled exactly by the training-mode BN mean subtraction below.
    xk = jnp.concatenate([x_prev, x2d, x_next], axis=1)        # (NH, 3*WC)
    acc = jnp.dot(xk, bw, preferred_element_type=jnp.float32)  # (NH, WC)

    # Training-mode BatchNorm2d batch stats (biased variance, eps=1e-5),
    # centered two-pass form (acc is register/VMEM resident, so the second
    # pass is cheap and avoids E[x^2]-E[x]^2 cancellation).
    s1 = jnp.sum(acc, axis=0, keepdims=True)                   # (1, WC)
    mean = _channel_totals(s1, W, C) * inv_count               # channel-tiled
    d = acc - mean
    s2 = jnp.sum(d * d, axis=0, keepdims=True)                 # (1, WC)
    var = _channel_totals(s2, W, C) * inv_count
    scale = gamma * jax.lax.rsqrt(var + EPS)                   # EUP rsqrt
    return jnp.maximum(d * scale + beta, 0.0)                  # BN + ReLU


def _resblock_kernel(x_ref, bw1_ref, g1_ref, be1_ref,
                     bw2_ref, g2_ref, be2_ref, o_ref, *, H, W, C):
    x2d = x_ref[...]                           # (N*H, W*C), lane-dense
    NH = x2d.shape[0]

    # Row-within-image index; computed once, reused by both blocks.
    row = jax.lax.broadcasted_iota(jnp.int32, (NH, 1), 0)
    h = (row & (H - 1)) if (H & (H - 1)) == 0 else (row % H)
    not_first = h != 0
    not_last = h != (H - 1)

    h1 = _conv_bn_relu(x2d, not_first, not_last,
                       bw1_ref[...], g1_ref[...], be1_ref[...], W, C)
    h2 = _conv_bn_relu(h1, not_first, not_last,
                       bw2_ref[...], g2_ref[...], be2_ref[...], W, C)
    o_ref[...] = h2 + x2d                      # residual add, unmasked store


# ---------------------------------------------------------------------------
# One-time parameter re-layout (hoisted out of the per-step jit)
# ---------------------------------------------------------------------------
def _build_banded_weights(w, W, C):
    """(3, 3, Cin, Cout) conv weight -> (3, W*C, W*C) banded matrices.

    B[kh][w_in*C + cin, w_out*C + cout] = w[kh, w_in - w_out + 1, cin, cout]
    (zero when the kw index falls outside [0, 3)), so one matmul over the
    merged W*C lane axis applies all three W taps plus the Cin->Cout
    contraction, with SAME padding in W handled implicitly.
    """
    WC = W * C
    kw = jnp.arange(W)[:, None] - jnp.arange(W)[None, :] + 1      # (W_in, W_out)
    valid = (kw >= 0) & (kw < 3)
    g = w[:, jnp.clip(kw, 0, 2), :, :]                            # (3,W,W,Ci,Co)
    g = jnp.where(valid[None, :, :, None, None], g, 0.0)
    g = jnp.transpose(g, (0, 1, 3, 2, 4))                         # (3,Wi,Ci,Wo,Co)
    return g.reshape(3, WC, WC)


def _tile_channels(v, W):
    """(1, C) per-channel param -> (1, W*C) in the interleaved lane pattern."""
    return jnp.tile(v.reshape(-1), W).reshape(1, -1)


def prepare_operands(params, W):
    """Build the kernel-ready slabs once (do NOT redo this per forward)."""
    (w1, b1, g1, be1, w2, b2, g2, be2) = params
    del b1, b2  # cancelled exactly by training-mode BN mean subtraction
    C = w1.shape[2]
    WC = W * C
    bw1 = _build_banded_weights(w1, W, C).reshape(3 * WC, WC)
    bw2 = _build_banded_weights(w2, W, C).reshape(3 * WC, WC)
    return (bw1, _tile_channels(g1, W), _tile_channels(be1, W),
            bw2, _tile_channels(g2, W), _tile_channels(be2, W))


# ---------------------------------------------------------------------------
# Forward wrapper
# ---------------------------------------------------------------------------
@jax.jit
def residual_block_bn_relu(x_nchw, prepared):
    """Forward pass of ResidualBlockBNReLU.

    x_nchw   : (N, C, H, W) float32.
    prepared : output of prepare_operands(params, W).
    """
    N, C, H, W = x_nchw.shape
    WC = W * C
    NH = N * H
    # NCHW -> NHWC -> lane-dense (N*H, W*C) slab (free reshape, row-major).
    x2d = jnp.transpose(x_nchw, (0, 2, 3, 1)).reshape(NH, WC)
    bw1, g1b, be1b, bw2, g2b, be2b = prepared

    vmem = pl.BlockSpec(memory_space=pltpu.MemorySpace.VMEM)
    cost = pl.CostEstimate(
        flops=int(2 * (2 * NH * (3 * WC) * WC) + 12 * NH * WC),
        transcendentals=int(2 * WC),
        bytes_accessed=int(4 * (2 * NH * WC + 2 * 3 * WC * WC + 4 * WC)),
    )
    # TODO(synk): for large N*H*W, grid this into a two-pass BN (pass 1:
    # fused conv + per-channel sum/sumsq accumulation over row tiles marked
    # "parallel" so v7x's two TensorCores both work; pass 2: normalize +
    # residual), with bf16 matmul inputs and per-generation tile sizes
    # (v7x: 64 MiB VMEM).  At the demo shape the whole problem (<1 MiB)
    # fits VMEM, so a single un-gridded invocation is optimal.
    out2d = pl.pallas_call(
        functools.partial(_resblock_kernel, H=H, W=W, C=C),
        out_shape=jax.ShapeDtypeStruct((NH, WC), jnp.float32),
        in_specs=[vmem] * 7,
        out_specs=vmem,
        cost_estimate=cost,
    )(x2d, bw1, g1b, be1b, bw2, g2b, be2b)

    return jnp.transpose(out2d.reshape(N, H, W, C), (0, 3, 1, 2))


# ---------------------------------------------------------------------------
# Params / reference / test
# ---------------------------------------------------------------------------
def init_params(key, channels):
    """Deterministic synthetic parameters (shapes match the PyTorch module).

    Conv weights are stored as (3, 3, Cin, Cout) == torch weight.transpose(2,3,1,0).
    """
    k1, k2, k3, k4 = jax.random.split(key, 4)
    C = channels
    w1 = 0.1 * jax.random.normal(k1, (3, 3, C, C), jnp.float32)
    b1 = 0.1 * jax.random.normal(k2, (1, C), jnp.float32)
    g1 = jnp.ones((1, C), jnp.float32)
    be1 = jnp.zeros((1, C), jnp.float32)
    w2 = 0.1 * jax.random.normal(k3, (3, 3, C, C), jnp.float32)
    b2 = 0.1 * jax.random.normal(k4, (1, C), jnp.float32)
    g2 = jnp.ones((1, C), jnp.float32)
    be2 = jnp.zeros((1, C), jnp.float32)
    return (w1, b1, g1, be1, w2, b2, g2, be2)


def _reference(x_nchw, params):
    """Pure-JAX reference (explicit conv bias + two-pass BN) for checking."""
    (w1, b1, g1, be1, w2, b2, g2, be2) = params
    x = jnp.transpose(x_nchw, (0, 2, 3, 1))  # NHWC

    def block(h, w, b, g, be):
        y = jax.lax.conv_general_dilated(
            h, w, window_strides=(1, 1), padding="SAME",
            dimension_numbers=("NHWC", "HWIO", "NHWC"))
        y = y + b.reshape(1, 1, 1, -1)
        mean = jnp.mean(y, axis=(0, 1, 2), keepdims=True)
        var = jnp.mean((y - mean) ** 2, axis=(0, 1, 2), keepdims=True)
        y = (y - mean) * jax.lax.rsqrt(var + EPS)
        y = y * g.reshape(1, 1, 1, -1) + be.reshape(1, 1, 1, -1)
        return jnp.maximum(y, 0.0)

    h = block(x, w1, b1, g1, be1)
    h = block(h, w2, b2, g2, be2)
    out = h + x
    return jnp.transpose(out, (0, 3, 1, 2))


if __name__ == "__main__":
    key = jax.random.PRNGKey(0)
    kx, kp = jax.random.split(key)

    N, C, H, W = 2, 8, 16, 16            # W*C = 128 -> lane-dense slabs
    x = jax.random.normal(kx, (N, C, H, W), jnp.float32)
    params = init_params(kp, C)
    prepared = prepare_operands(params, W)   # one-time parameter re-layout

    out = jax.block_until_ready(residual_block_bn_relu(x, prepared))

    ref = _reference(x, params)
    assert out.shape == (N, C, H, W)
    assert jnp.allclose(out, ref, atol=1e-4, rtol=1e-4), "mismatch vs reference"

    print("KERNEL_OK")
</pallas_src>

<mosaic_0001>
module attributes {stable_mosaic.version = 11 : i64} {
  func.func @_resblock_kernel(%arg0: memref<32x128xf32, #tpu.memory_space<vmem>>, %arg1: memref<384x128xf32, #tpu.memory_space<vmem>>, %arg2: memref<1x128xf32, #tpu.memory_space<vmem>>, %arg3: memref<1x128xf32, #tpu.memory_space<vmem>>, %arg4: memref<384x128xf32, #tpu.memory_space<vmem>>, %arg5: memref<1x128xf32, #tpu.memory_space<vmem>>, %arg6: memref<1x128xf32, #tpu.memory_space<vmem>>, %arg7: memref<32x128xf32, #tpu.memory_space<vmem>>) attributes {dimension_semantics = [], scalar_prefetch = 0 : i64, scratch_operands = 0 : i64, tpu.core_type = #tpu.core_type<tc>} {
    %c0 = arith.constant 0 : index
    %c0_0 = arith.constant 0 : index
    %0 = vector.load %arg0[%c0, %c0_0] : memref<32x128xf32, #tpu.memory_space<vmem>>, vector<32x128xf32>
    %1 = tpu.iota {dimensions = array<i32: 0>} : vector<32x1xi32>
    %c15_i32 = arith.constant 15 : i32
    %2 = vector.broadcast %c15_i32 : i32 to vector<32x1xi32>
    %3 = arith.andi %1, %2 : vector<32x1xi32>
    %c0_i32 = arith.constant 0 : i32
    %4 = vector.broadcast %c0_i32 : i32 to vector<32x1xi32>
    %5 = arith.cmpi ne, %3, %4 : vector<32x1xi32>
    %c15_i32_1 = arith.constant 15 : i32
    %6 = vector.broadcast %c15_i32_1 : i32 to vector<32x1xi32>
    %7 = arith.cmpi ne, %3, %6 : vector<32x1xi32>
    %c0_2 = arith.constant 0 : index
    %c0_3 = arith.constant 0 : index
    %8 = vector.load %arg1[%c0_2, %c0_3] : memref<384x128xf32, #tpu.memory_space<vmem>>, vector<384x128xf32>
    %c0_4 = arith.constant 0 : index
    %c0_5 = arith.constant 0 : index
    %9 = vector.load %arg2[%c0_4, %c0_5] : memref<1x128xf32, #tpu.memory_space<vmem>>, vector<1x128xf32>
    %c0_6 = arith.constant 0 : index
    %c0_7 = arith.constant 0 : index
    %10 = vector.load %arg3[%c0_6, %c0_7] : memref<1x128xf32, #tpu.memory_space<vmem>>, vector<1x128xf32>
    %c1_i32 = arith.constant 1 : i32
    %11 = tpu.dynamic_rotate %0 by %c1_i32 dim 0 : vector<32x128xf32>, i32 -> vector<32x128xf32>
    %cst = arith.constant 0.000000e+00 : f32
    %12 = vector.shape_cast %5 : vector<32x1xi1> to vector<32x1xi1>
    %13 = vector.broadcast %12 : vector<32x1xi1> to vector<32x128xi1>
    %14 = vector.broadcast %cst : f32 to vector<32x128xf32>
    %15 = arith.select %13, %11, %14 : vector<32x128xi1>, vector<32x128xf32>
    %c31_i32 = arith.constant 31 : i32
    %16 = tpu.dynamic_rotate %0 by %c31_i32 dim 0 : vector<32x128xf32>, i32 -> vector<32x128xf32>
    %cst_8 = arith.constant 0.000000e+00 : f32
    %17 = vector.shape_cast %7 : vector<32x1xi1> to vector<32x1xi1>
    %18 = vector.broadcast %17 : vector<32x1xi1> to vector<32x128xi1>
    %19 = vector.broadcast %cst_8 : f32 to vector<32x128xf32>
    %20 = arith.select %18, %16, %19 : vector<32x128xi1>, vector<32x128xf32>
    %21 = tpu.concatenate %15, %0, %20 in 1 : vector<32x128xf32>, vector<32x128xf32>, vector<32x128xf32> -> vector<32x384xf32>
    %cst_9 = arith.constant dense<0.000000e+00> : vector<32x128xf32>
    %22 = tpu.matmul %21, %8, %cst_9 {dimension_numbers = #tpu.dot_dimension_numbers<[1], [0], [0], [1], [0, 0, 1, 1], [], []>} : vector<32x384xf32>, vector<384x128xf32>, vector<32x128xf32> -> vector<32x128xf32>
    %cst_10 = arith.constant dense<0.000000e+00> : vector<128xf32>
    %23 = vector.multi_reduction <add>, %22, %cst_10 [0] : vector<32x128xf32> to vector<128xf32>
    %24 = vector.shape_cast %23 : vector<128xf32> to vector<1x128xf32>
    %c8_i32 = arith.constant 8 : i32
    %25 = tpu.dynamic_rotate %24 by %c8_i32 dim 1 : vector<1x128xf32>, i32 -> vector<1x128xf32>
    %26 = arith.addf %24, %25 : vector<1x128xf32>
    %c16_i32 = arith.constant 16 : i32
    %27 = tpu.dynamic_rotate %26 by %c16_i32 dim 1 : vector<1x128xf32>, i32 -> vector<1x128xf32>
    %28 = arith.addf %26, %27 : vector<1x128xf32>
    %c32_i32 = arith.constant 32 : i32
    %29 = tpu.dynamic_rotate %28 by %c32_i32 dim 1 : vector<1x128xf32>, i32 -> vector<1x128xf32>
    %30 = arith.addf %28, %29 : vector<1x128xf32>
    %c64_i32 = arith.constant 64 : i32
    %31 = tpu.dynamic_rotate %30 by %c64_i32 dim 1 : vector<1x128xf32>, i32 -> vector<1x128xf32>
    %32 = arith.addf %30, %31 : vector<1x128xf32>
    %cst_11 = arith.constant 0.001953125 : f32
    %33 = vector.broadcast %cst_11 : f32 to vector<1x128xf32>
    %34 = arith.mulf %32, %33 : vector<1x128xf32>
    %35 = vector.broadcast %34 : vector<1x128xf32> to vector<32x128xf32>
    %36 = arith.subf %22, %35 : vector<32x128xf32>
    %37 = arith.mulf %36, %36 : vector<32x128xf32>
    %cst_12 = arith.constant dense<0.000000e+00> : vector<128xf32>
    %38 = vector.multi_reduction <add>, %37, %cst_12 [0] : vector<32x128xf32> to vector<128xf32>
    %39 = vector.shape_cast %38 : vector<128xf32> to vector<1x128xf32>
    %c8_i32_13 = arith.constant 8 : i32
    %40 = tpu.dynamic_rotate %39 by %c8_i32_13 dim 1 : vector<1x128xf32>, i32 -> vector<1x128xf32>
    %41 = arith.addf %39, %40 : vector<1x128xf32>
    %c16_i32_14 = arith.constant 16 : i32
    %42 = tpu.dynamic_rotate %41 by %c16_i32_14 dim 1 : vector<1x128xf32>, i32 -> vector<1x128xf32>
    %43 = arith.addf %41, %42 : vector<1x128xf32>
    %c32_i32_15 = arith.constant 32 : i32
    %44 = tpu.dynamic_rotate %43 by %c32_i32_15 dim 1 : vector<1x128xf32>, i32 -> vector<1x128xf32>
    %45 = arith.addf %43, %44 : vector<1x128xf32>
    %c64_i32_16 = arith.constant 64 : i32
    %46 = tpu.dynamic_rotate %45 by %c64_i32_16 dim 1 : vector<1x128xf32>, i32 -> vector<1x128xf32>
    %47 = arith.addf %45, %46 : vector<1x128xf32>
    %cst_17 = arith.constant 0.001953125 : f32
    %48 = vector.broadcast %cst_17 : f32 to vector<1x128xf32>
    %49 = arith.mulf %47, %48 : vector<1x128xf32>
    %cst_18 = arith.constant 9.99999974E-6 : f32
    %50 = vector.broadcast %cst_18 : f32 to vector<1x128xf32>
    %51 = arith.addf %49, %50 : vector<1x128xf32>
    %52 = math.rsqrt %51 : vector<1x128xf32>
    %53 = arith.mulf %9, %52 : vector<1x128xf32>
    %54 = vector.broadcast %53 : vector<1x128xf32> to vector<32x128xf32>
    %55 = arith.mulf %36, %54 : vector<32x128xf32>
    %56 = vector.broadcast %10 : vector<1x128xf32> to vector<32x128xf32>
    %57 = arith.addf %55, %56 : vector<32x128xf32>
    %cst_19 = arith.constant 0.000000e+00 : f32
    %58 = vector.broadcast %cst_19 : f32 to vector<32x128xf32>
    %59 = arith.maximumf %57, %58 : vector<32x128xf32>
    %c0_20 = arith.constant 0 : index
    %c0_21 = arith.constant 0 : index
    %60 = vector.load %arg4[%c0_20, %c0_21] : memref<384x128xf32, #tpu.memory_space<vmem>>, vector<384x128xf32>
    %c0_22 = arith.constant 0 : index
    %c0_23 = arith.constant 0 : index
    %61 = vector.load %arg5[%c0_22, %c0_23] : memref<1x128xf32, #tpu.memory_space<vmem>>, vector<1x128xf32>
    %c0_24 = arith.constant 0 : index
    %c0_25 = arith.constant 0 : index
    %62 = vector.load %arg6[%c0_24, %c0_25] : memref<1x128xf32, #tpu.memory_space<vmem>>, vector<1x128xf32>
    %c1_i32_26 = arith.constant 1 : i32
    %63 = tpu.dynamic_rotate %59 by %c1_i32_26 dim 0 : vector<32x128xf32>, i32 -> vector<32x128xf32>
    %cst_27 = arith.constant 0.000000e+00 : f32
    %64 = vector.shape_cast %5 : vector<32x1xi1> to vector<32x1xi1>
    %65 = vector.broadcast %64 : vector<32x1xi1> to vector<32x128xi1>
    %66 = vector.broadcast %cst_27 : f32 to vector<32x128xf32>
    %67 = arith.select %65, %63, %66 : vector<32x128xi1>, vector<32x128xf32>
    %c31_i32_28 = arith.constant 31 : i32
    %68 = tpu.dynamic_rotate %59 by %c31_i32_28 dim 0 : vector<32x128xf32>, i32 -> vector<32x128xf32>
    %cst_29 = arith.constant 0.000000e+00 : f32
    %69 = vector.shape_cast %7 : vector<32x1xi1> to vector<32x1xi1>
    %70 = vector.broadcast %69 : vector<32x1xi1> to vector<32x128xi1>
    %71 = vector.broadcast %cst_29 : f32 to vector<32x128xf32>
    %72 = arith.select %70, %68, %71 : vector<32x128xi1>, vector<32x128xf32>
    %73 = tpu.concatenate %67, %59, %72 in 1 : vector<32x128xf32>, vector<32x128xf32>, vector<32x128xf32> -> vector<32x384xf32>
    %cst_30 = arith.constant dense<0.000000e+00> : vector<32x128xf32>
    %74 = tpu.matmul %73, %60, %cst_30 {dimension_numbers = #tpu.dot_dimension_numbers<[1], [0], [0], [1], [0, 0, 1, 1], [], []>} : vector<32x384xf32>, vector<384x128xf32>, vector<32x128xf32> -> vector<32x128xf32>
    %cst_31 = arith.constant dense<0.000000e+00> : vector<128xf32>
    %75 = vector.multi_reduction <add>, %74, %cst_31 [0] : vector<32x128xf32> to vector<128xf32>
    %76 = vector.shape_cast %75 : vector<128xf32> to vector<1x128xf32>
    %c8_i32_32 = arith.constant 8 : i32
    %77 = tpu.dynamic_rotate %76 by %c8_i32_32 dim 1 : vector<1x128xf32>, i32 -> vector<1x128xf32>
    %78 = arith.addf %76, %77 : vector<1x128xf32>
    %c16_i32_33 = arith.constant 16 : i32
    %79 = tpu.dynamic_rotate %78 by %c16_i32_33 dim 1 : vector<1x128xf32>, i32 -> vector<1x128xf32>
    %80 = arith.addf %78, %79 : vector<1x128xf32>
    %c32_i32_34 = arith.constant 32 : i32
    %81 = tpu.dynamic_rotate %80 by %c32_i32_34 dim 1 : vector<1x128xf32>, i32 -> vector<1x128xf32>
    %82 = arith.addf %80, %81 : vector<1x128xf32>
    %c64_i32_35 = arith.constant 64 : i32
    %83 = tpu.dynamic_rotate %82 by %c64_i32_35 dim 1 : vector<1x128xf32>, i32 -> vector<1x128xf32>
    %84 = arith.addf %82, %83 : vector<1x128xf32>
    %cst_36 = arith.constant 0.001953125 : f32
    %85 = vector.broadcast %cst_36 : f32 to vector<1x128xf32>
    %86 = arith.mulf %84, %85 : vector<1x128xf32>
    %87 = vector.broadcast %86 : vector<1x128xf32> to vector<32x128xf32>
    %88 = arith.subf %74, %87 : vector<32x128xf32>
    %89 = arith.mulf %88, %88 : vector<32x128xf32>
    %cst_37 = arith.constant dense<0.000000e+00> : vector<128xf32>
    %90 = vector.multi_reduction <add>, %89, %cst_37 [0] : vector<32x128xf32> to vector<128xf32>
    %91 = vector.shape_cast %90 : vector<128xf32> to vector<1x128xf32>
    %c8_i32_38 = arith.constant 8 : i32
    %92 = tpu.dynamic_rotate %91 by %c8_i32_38 dim 1 : vector<1x128xf32>, i32 -> vector<1x128xf32>
    %93 = arith.addf %91, %92 : vector<1x128xf32>
    %c16_i32_39 = arith.constant 16 : i32
    %94 = tpu.dynamic_rotate %93 by %c16_i32_39 dim 1 : vector<1x128xf32>, i32 -> vector<1x128xf32>
    %95 = arith.addf %93, %94 : vector<1x128xf32>
    %c32_i32_40 = arith.constant 32 : i32
    %96 = tpu.dynamic_rotate %95 by %c32_i32_40 dim 1 : vector<1x128xf32>, i32 -> vector<1x128xf32>
    %97 = arith.addf %95, %96 : vector<1x128xf32>
    %c64_i32_41 = arith.constant 64 : i32
    %98 = tpu.dynamic_rotate %97 by %c64_i32_41 dim 1 : vector<1x128xf32>, i32 -> vector<1x128xf32>
    %99 = arith.addf %97, %98 : vector<1x128xf32>
    %cst_42 = arith.constant 0.001953125 : f32
    %100 = vector.broadcast %cst_42 : f32 to vector<1x128xf32>
    %101 = arith.mulf %99, %100 : vector<1x128xf32>
    %cst_43 = arith.constant 9.99999974E-6 : f32
    %102 = vector.broadcast %cst_43 : f32 to vector<1x128xf32>
    %103 = arith.addf %101, %102 : vector<1x128xf32>
    %104 = math.rsqrt %103 : vector<1x128xf32>
    %105 = arith.mulf %61, %104 : vector<1x128xf32>
    %106 = vector.broadcast %105 : vector<1x128xf32> to vector<32x128xf32>
    %107 = arith.mulf %88, %106 : vector<32x128xf32>
    %108 = vector.broadcast %62 : vector<1x128xf32> to vector<32x128xf32>
    %109 = arith.addf %107, %108 : vector<32x128xf32>
    %cst_44 = arith.constant 0.000000e+00 : f32
    %110 = vector.broadcast %cst_44 : f32 to vector<32x128xf32>
    %111 = arith.maximumf %109, %110 : vector<32x128xf32>
    %112 = arith.addf %111, %0 : vector<32x128xf32>
    %c0_45 = arith.constant 0 : index
    %c0_46 = arith.constant 0 : index
    %113 = vector.load %arg7[%c0_45, %c0_46] : memref<32x128xf32, #tpu.memory_space<vmem>>, vector<32x128xf32>
    tpu.vector_store %arg7[%c0_45, %c0_46], %112 {strides = array<i32>} : memref<32x128xf32, #tpu.memory_space<vmem>>, vector<32x128xf32>,
    return
  }
}

</mosaic_0001>

<bundles_post_ra>
// kernel: residual_block_bn_relu.1
= control target key start
LH: loop header
LB: loop body
LE: loop exit
PB: predicated region body
PF: predicated region fallthrough
CT: control target
= control target key end

     0   :  { %v30_v39 = vlaneseq  ;;  %s1083_s13 = smov 32   ;;  %s1084_s14 = smov 64   ;;  %s1592_s1 = inlined_call_operand.vmem [shape: f32[384,128], index: 1, kind: input, shape index: {}]   ;;  %s1593_s0 = inlined_call_operand.vmem [shape: f32[32,128], index: 0, kind: input, shape index: {}]   ;;  %s1594_s4 = inlined_call_operand.vmem [shape: f32[384,128], index: 4, kind: input, shape index: {}]   ;;  %s1595_s2 = inlined_call_operand.vmem [shape: f32[1,128], index: 2, kind: input, shape index: {}]   ;;  %s1596_s3 = inlined_call_operand.vmem [shape: f32[1,128], index: 3, kind: input, shape index: {}]   ;;  %s1597_s5 = inlined_call_operand.vmem [shape: f32[1,128], index: 5, kind: input, shape index: {}]   ;;  %s1598_s6 = inlined_call_operand.vmem [shape: f32[1,128], index: 6, kind: input, shape index: {}]   ;;  %s1599_s7 = inlined_call_operand.vmem [shape: f32[32,128], index: 7, kind: output, shape index: {}]  }
   0x1   :  { %v63_v0 = vld [vmem:[%s1592_s1 + $0x80] sm:$0xff]  ;;  %v64_v1 = vld [vmem:[%s1592_s1 + $0x88] sm:$0xff]  ;;  %v65_v9 = vld [vmem:[%s1592_s1 + $0x90] sm:$0xff] }
   0x2   :  { %v47_v2 = vld [vmem:[%s1592_s1] sm:$0xff]  ;;  %v945_v3 = vpack.c.bf16 %v64_v1, %v63_v0  ;;  %v48_v4 = vld [vmem:[%s1592_s1 + $0x8] sm:$0xff]  ;;  %v66_v10 = vld [vmem:[%s1592_s1 + $0x98] sm:$0xff]  ;;  %v1227_v49 = vshrl.u32 %v30_v39, 7 }
   0x3   :  { %v79_v5 = vld [vmem:[%s1592_s1 + $0x100] sm:$0xff]  ;;  %v80_v6 = vld [vmem:[%s1592_s1 + $0x108] sm:$0xff]  ;;  %v947_v7 = vpack.c.bf16 %v48_v4, %v47_v2  ;;  %v49_v11 = vld [vmem:[%s1592_s1 + $0x10] sm:$0xff]  ;;  %v949_v12 = vpack.c.bf16 %v66_v10, %v65_v9 }
   0x4   :  { %v977_v8 = vpack.c.bf16 %v80_v6, %v79_v5  ;;  %946 = vmatprep.subr.bf16.mxu0 %v945_v3  ;;  %v50_v13 = vld [vmem:[%s1592_s1 + $0x18] sm:$0xff]  ;;  %v81_v14 = vld [vmem:[%s1592_s1 + $0x110] sm:$0xff]  ;;  %v67_v18 = vld [vmem:[%s1592_s1 + $0xa0] sm:$0xff]  ;;  %vm122_vm0 = vcmp.lt.s32.totalorder %v1227_v49, 7  ;;  %vm101_vm1 = vcmp.lt.s32.totalorder %v1227_v49, 1 }
   0x5   :  { %v82_v15 = vld [vmem:[%s1592_s1 + $0x118] sm:$0xff]  ;;  %948 = vmatpush3.bf16.msra.mxu0 %v947_v7  ;;  %v951_v16 = vpack.c.bf16 %v50_v13, %v49_v11  ;;  %v68_v19 = vld [vmem:[%s1592_s1 + $0xa8] sm:$0xff]  ;;  %v51_v20 = vld [vmem:[%s1592_s1 + $0x20] sm:$0xff] }
   0x6   :  { %978 = vmatprep.subr.bf16.mxu1 %v977_v8  ;;  %v981_v17 = vpack.c.bf16 %v82_v15, %v81_v14  ;;  %950 = vmatprep.subr.bf16.mxu0 %v949_v12  ;;  %v953_v21 = vpack.c.bf16 %v68_v19, %v67_v18  ;;  %v52_v22 = vld [vmem:[%s1592_s1 + $0x28] sm:$0xff]  ;;  %v83_v23 = vld [vmem:[%s1592_s1 + $0x120] sm:$0xff]  ;;  %v69_v26 = vld [vmem:[%s1592_s1 + $0xb0] sm:$0xff]  ;;  %v32_v14 = vadd.s32 8, %v1227_v49  ;;  %v35_v19 = vand.u32 15, %v1227_v49 }
   0x7   :  { %980 = vmatpush3.bf16.msra.mxu1 %v977_v8  ;;  %v84_v24 = vld [vmem:[%s1592_s1 + $0x128] sm:$0xff]  ;;  %v70_v27 = vld [vmem:[%s1592_s1 + $0xb8] sm:$0xff]  ;;  %v85_v28 = vld [vmem:[%s1592_s1 + $0x130] sm:$0xff]  ;;  %v955_v30 = vpack.c.bf16 %v52_v22, %v51_v20 }
   0x8   :  { %982 = vmatprep.subr.bf16.mxu1 %v981_v17  ;;  %v985_v25 = vpack.c.bf16 %v84_v24, %v83_v23  ;;  %v86_v29 = vld [vmem:[%s1592_s1 + $0x138] sm:$0xff]  ;;  %v957_v31 = vpack.c.bf16 %v70_v27, %v69_v26  ;;  %v53_v32 = vld [vmem:[%s1592_s1 + $0x30] sm:$0xff]  ;;  %v71_v35 = vld [vmem:[%s1592_s1 + $0xc0] sm:$0xff]  ;;  %v34_v23 = vadd.s32 24, %v1227_v49  ;;  %vm1307_vm2 = vcmp.ne.s32.totalorder %v35_v19, 0 }
   0x9   :  { %952 = vmatpush3.bf16.msra.mxu0 %v951_v16  ;;  %v54_v33 = vld [vmem:[%s1592_s1 + $0x38] sm:$0xff]  ;;  %v989_v34 = vpack.c.bf16 %v86_v29, %v85_v28  ;;  %v72_v36 = vld [vmem:[%s1592_s1 + $0xc8] sm:$0xff]  ;;  %v87_v37 = vld [vmem:[%s1592_s1 + $0x140] sm:$0xff]  ;;  %v33_v28 = vadd.s32 16, %v1227_v49 }
   0xa   :  { %954 = vmatprep.subr.bf16.mxu0 %v953_v21  ;;  %v88_v38 = vld [vmem:[%s1592_s1 + $0x148] sm:$0xff]  ;;  %v959_v40 = vpack.c.bf16 %v54_v33, %v53_v32  ;;  %v961_v41 = vpack.c.bf16 %v72_v36, %v71_v35  ;;  %v55_v42 = vld [vmem:[%s1592_s1 + $0x40] sm:$0xff]  ;;  %v73_v45 = vld [vmem:[%s1592_s1 + $0xd0] sm:$0xff]  ;;  %v36_v21 = vand.u32 15, %v32_v14 }
   0xb   :  { %984 = vmatpush3.bf16.msra.mxu1 %v981_v17  ;;  %v56_v43 = vld [vmem:[%s1592_s1 + $0x48] sm:$0xff]  ;;  %v993_v44 = vpack.c.bf16 %v88_v38, %v87_v37  ;;  %v74_v46 = vld [vmem:[%s1592_s1 + $0xd8] sm:$0xff]  ;;  %v89_v47 = vld [vmem:[%s1592_s1 + $0x150] sm:$0xff] }
   0xc   :  { %986 = vmatprep.subr.bf16.mxu1 %v985_v25  ;;  %v90_v48 = vld [vmem:[%s1592_s1 + $0x158] sm:$0xff]  ;;  %v963_v50 = vpack.c.bf16 %v56_v43, %v55_v42  ;;  %v1232_v51 = vld [vmem:[%s1593_s0] sm:$0xff]  ;;  %v965_v52 = vpack.c.bf16 %v74_v46, %v73_v45  ;;  %v57_v53 = vld [vmem:[%s1592_s1 + $0x50] sm:$0xff]  ;;  %vm1315_vm3 = vcmp.ne.s32.totalorder %v36_v21, 15 }
   0xd   :  { %956 = vmatpush3.bf16.msra.mxu0 %v955_v30  ;;  %v58_v54 = vld [vmem:[%s1592_s1 + $0x58] sm:$0xff]  ;;  %v1243_v55 = vld [vmem:[%s1593_s0 + $0x8] sm:$0xff]  ;;  %v118_v56 = vrot.slane %v1232_v51, 1  ;;  %v997_v57 = vpack.c.bf16 %v90_v48, %v89_v47  ;;  %v75_v58 = vld [vmem:[%s1592_s1 + $0xe0] sm:$0xff]  ;;  %203 = vmatprep.mubr.f32.mxu0 %v1232_v51  ;;  %v97_v18 = vrot.slane %v1232_v51, 7 }
   0xe   :  { %958 = vmatprep.subr.bf16.mxu0 %v957_v31  ;;  %v76_v59 = vld [vmem:[%s1592_s1 + $0xe8] sm:$0xff]  ;;  %v119_v60 = vrot.slane %v1243_v55, 1  ;;  %v91_v61 = vld [vmem:[%s1592_s1 + $0x160] sm:$0xff]  ;;  %v967_v63 = vpack.c.bf16 %v58_v54, %v57_v53  ;;  %v77_v5 = vld [vmem:[%s1592_s1 + $0xf0] sm:$0xff]  ;;  %v98_v27 = vrot.slane %v1243_v55, 7  ;;  %v38_v31 = vand.u32 15, %v34_v23 }
   0xf   :  { %988 = vmatpush3.bf16.msra.mxu1 %v985_v25  ;;  %v92_v62 = vld [vmem:[%s1592_s1 + $0x168] sm:$0xff]  ;;  %v969_v1 = vpack.c.bf16 %v76_v59, %v75_v58  ;;  %v59_v2 = vld [vmem:[%s1592_s1 + $0x60] sm:$0xff]  ;;  %v78_v6 = vld [vmem:[%s1592_s1 + $0xf8] sm:$0xff] }
  0x10   :  { %990 = vmatprep.subr.bf16.mxu1 %v989_v34  ;;  %v125_v0 = vsel %vm122_vm0, %v118_v56, %v119_v60  ;;  %v60_v3 = vld [vmem:[%s1592_s1 + $0x68] sm:$0xff]  ;;  %v1001_v4 = vpack.c.bf16 %v92_v62, %v91_v61  ;;  %v93_v7 = vld [vmem:[%s1592_s1 + $0x170] sm:$0xff]  ;;  %v94_v8 = vld [vmem:[%s1592_s1 + $0x178] sm:$0xff]  ;;  %v973_v10 = vpack.c.bf16 %v78_v6, %v77_v5  ;;  %v104_v33 = vsel %vm101_vm1, %v97_v18, %v98_v27 }
  0x11   :  { %960 = vmatpush3.bf16.msra.mxu0 %v959_v40  ;;  %901 = vmatprep.mubr.f32.mxu1 %v125_v0  ;;  %v971_v9 = vpack.c.bf16 %v60_v3, %v59_v2  ;;  %v61_v11 = vld [vmem:[%s1592_s1 + $0x70] sm:$0xff]  ;;  %v62_v12 = vld [vmem:[%s1592_s1 + $0x78] sm:$0xff]  ;;  %v1005_v15 = vpack.c.bf16 %v94_v8, %v93_v7  ;;  %vm1331_vm4 = vcmp.ne.s32.totalorder %v38_v31, 15  ;;  %s1082_s1 = smov 16  }
  0x12   :  { %962 = vmatprep.subr.bf16.mxu0 %v961_v41  ;;  %v1292_v13 = vld [vmem:[%s1593_s0 + $0x18] sm:$0xff]  ;;  %v1298_v16 = vld [vmem:[%s1593_s0 + $0x10] sm:$0xff]  ;;  %v975_v17 = vpack.c.bf16 %v62_v12, %v61_v11  ;;  %s1081_s0 = smov 8  }
  0x13   :  { %992 = vmatpush3.bf16.msra.mxu1 %v989_v34  ;;  %v100_v20 = vrot.slane %v1292_v13, 7  ;;  %v120_v22 = vrot.slane %v1298_v16, 1  ;;  %v121_v24 = vrot.slane %v1292_v13, 1  ;;  %v37_v34 = vand.u32 15, %v33_v28 }
  0x14   :  { %994 = vmatprep.subr.bf16.mxu1 %v993_v44  ;;  %v99_v35 = vrot.slane %v1298_v16, 7 }
  0x15   :  { %964 = vmatpush3.bf16.msra.mxu0 %v963_v50  ;;  %v105_v26 = vsel %vm101_vm1, %v100_v20, %v97_v18  ;;  %v124_v30 = vsel %vm122_vm0, %v119_v60, %v120_v22  ;;  %v123_v32 = vsel %vm122_vm0, %v120_v22, %v121_v24  ;;  %v126_v37 = vsel %vm122_vm0, %v121_v24, %v118_v56 }
  0x16   :  { %966 = vmatprep.subr.bf16.mxu0 %v965_v52  ;;  %vm1340_vm5 = vcmp.ne.s32.totalorder %v37_v34, 0  ;;  %v103_v39 = vsel %vm101_vm1, %v98_v27, %v99_v35  ;;  %v102_v40 = vsel %vm101_vm1, %v99_v35, %v100_v20  ;;  %v1358_v18 = vsub.s32 0, %v1227_v49 }
  0x17   :  { %996 = vmatpush3.bf16.msra.mxu1 %v993_v44 }
  0x18   :  { %998 = vmatprep.subr.bf16.mxu1 %v997_v57 }
  0x19   :  { %968 = vmatpush3.bf16.msra.mxu0 %v967_v63 }
  0x1a   :  { %970 = vmatprep.subr.bf16.mxu0 %v969_v1 }
  0x1b   :  { %1000 = vmatpush3.bf16.msra.mxu1 %v997_v57 }
  0x1c   :  { %1002 = vmatprep.subr.bf16.mxu1 %v1001_v4 }
  0x1d   :  { %972 = vmatpush3.bf16.msra.mxu0 %v971_v9 }
  0x1e   :  { %974 = vmatprep.subr.bf16.mxu0 %v973_v10 }
  0x1f   :  { %1004 = vmatpush3.bf16.msra.mxu1 %v1001_v4 }
  0x20   :  { %1006 = vmatprep.subr.bf16.mxu1 %v1005_v15 }
  0x21   :  { %976 = vmatpush3.bf16.msra.mxu0 %v975_v17 }
  0x23   :  { %1008 = vmatpush3.bf16.msra.mxu1 %v1005_v15 }
  0x24   :  { %731 = vmatmul.mubr.msk.f32.vlgmr.msra.gmra.mrb[0].mxu0 %vm1307_vm2, %v105_v26 }
  0x25   :  { %208 = vmatprep.mubr.f32.mxu0 %v1243_v55 }
  0x26   :  { %902 = vmatmul.mubr.msk.f32.vlgmr.msra.gmra.mrb[0].mxu1 %vm1315_vm3, %v124_v30 }
  0x27   :  { %904 = vmatprep.mubr.f32.mxu1 %v123_v32 }
  0x28   :  { %209 = vmatmul.mubr.f32.gmra.mrb[2].mxu0 %v104_v33 }
  0x29   :  { %213 = vmatprep.mubr.f32.mxu0 %v1298_v16 }
  0x2a   :  { %905 = vmatmul.mubr.msk.f32.gmra.mrb[2].mxu1 %vm1331_vm4, %v126_v37 }
  0x2c   :  { %732 = vmatmul.mubr.msk.f32.gmra.mrb[4].mxu0 %vm1340_vm5, %v103_v39 }
  0x2d   :  { %218 = vmatprep.mubr.f32.mxu0 %v1292_v13 }
  0x30   :  { %219 = vmatmul.mubr.f32.gmra.mrb[6].mxu0 %v102_v40 }
  0xf7   :  { %v773_v41 = vpop.f32.mrb[0].mxu0 }
  0xf8   :  { %v774_v42 = vpop.f32.mrb[1].mxu0 }
  0xf9   :  { %v903_v43 = vpop.f32.mrb[0].mxu1  ;;  %v775_v44 = vadd.f32 %v774_v42, %v773_v41 }
  0xfa   :  { %v290_v45 = vpop.f32.mrb[1].mxu1 }
  0xfb   :  { %v291_v46 = vadd.f32 %v775_v44, %v290_v45  ;;  %v776_v47 = vpop.f32.mrb[2].mxu0  ;;  %v408_v45 = vld [vmem:[%s1594_s4 + $0x80] sm:$0xff] }
  0xfc   :  { %v777_v48 = vpop.f32.mrb[3].mxu0 }
  0xfd   :  { %v906_v50 = vpop.f32.mrb[2].mxu1  ;;  %v778_v52 = vadd.f32 %v777_v48, %v776_v47  ;;  %v392_v47 = vld [vmem:[%s1594_s4] sm:$0xff] }
  0xfe   :  { %v300_v53 = vpop.f32.mrb[3].mxu1 }
  0xff   :  { %v296_v54 = vadd.f32 %v903_v43, %v778_v52  ;;  %v779_v56 = vpop.f32.mrb[4].mxu0  ;;  %v424_v52 = vld [vmem:[%s1594_s4 + $0x100] sm:$0xff] }
 0x100   :  { %v780_v57 = vpop.f32.mrb[5].mxu0 }
 0x101   :  { %v781_v58 = vadd.f32 %v780_v57, %v779_v56  ;;  %v309_v62 = vadd.f32 %v296_v54, %v291_v46 }
 0x103   :  { %v301_v59 = vadd.f32 %v781_v58, %v300_v53  ;;  %v782_v60 = vpop.f32.mrb[6].mxu0  ;;  %v425_v53 = vld [vmem:[%s1594_s4 + $0x108] sm:$0xff] }
 0x104   :  { %v783_v61 = vpop.f32.mrb[7].mxu0  ;;  %v1041_v56 = vpack.c.bf16 %v425_v53, %v424_v52  ;;  %v435_v53 = vld [vmem:[%s1594_s4 + $0x158] sm:$0xff] }
 0x105   :  { %v784_v63 = vadd.f32 %v783_v61, %v782_v60  ;;  %v310_v0 = vadd.f32 %v309_v62, %v301_v59  ;;  %v411_v60 = vld [vmem:[%s1594_s4 + $0x98] sm:$0xff]  ;;  %v394_v62 = vld [vmem:[%s1594_s4 + $0x10] sm:$0xff] }
 0x106   :  { %1042 = vmatprep.subr.bf16.mxu1 %v1041_v56 }
 0x107   :  { %v306_v1 = vadd.f32 %v906_v50, %v784_v63  ;;  %v393_v50 = vld [vmem:[%s1594_s4 + $0x8] sm:$0xff]  ;;  %1044 = vmatpush3.bf16.msra.mxu1 %v1041_v56  ;;  %v395_v63 = vld [vmem:[%s1594_s4 + $0x18] sm:$0xff] }
 0x108   :  { %v421_v56 = vld [vmem:[%s1594_s4 + $0xe8] sm:$0xff] }
 0x109   :  { %v311_v2 = vadd.f32 %v310_v0, %v306_v1  ;;  %v426_v0 = vld [vmem:[%s1594_s4 + $0x110] sm:$0xff] }
 0x10b   :  { %v312_v3 = vrot.slane %v311_v2, 4 }
 0x10d   :  { %v313_v4 = vadd.f32 %v312_v3, %v311_v2  ;;  %v427_v2 = vld [vmem:[%s1594_s4 + $0x118] sm:$0xff] }
 0x10e   :  { %v1045_v3 = vpack.c.bf16 %v427_v2, %v426_v0  ;;  %v422_v0 = vld [vmem:[%s1594_s4 + $0xf0] sm:$0xff] }
 0x10f   :  { %v314_v5 = vrot.slane %v313_v4, 2 }
 0x110   :  { %1046 = vmatprep.subr.bf16.mxu1 %v1045_v3 }
 0x111   :  { %v315_v6 = vadd.f32 %v314_v5, %v313_v4  ;;  %v412_v4 = vld [vmem:[%s1594_s4 + $0xa0] sm:$0xff]  ;;  %v413_v5 = vld [vmem:[%s1594_s4 + $0xa8] sm:$0xff]  ;;  %1048 = vmatpush3.bf16.msra.mxu1 %v1045_v3 }
 0x113   :  { %v316_v7 = vrot.slane %v315_v6, 1 }
 0x115   :  { %v317_v8 = vadd.f32 %v316_v7, %v315_v6  ;;  %v1017_v6 = vpack.c.bf16 %v413_v5, %v412_v4  ;;  %v396_v7 = vld [vmem:[%s1594_s4 + $0x20] sm:$0xff]  ;;  %v406_v4 = vld [vmem:[%s1594_s4 + $0x70] sm:$0xff]  ;;  %v407_v5 = vld [vmem:[%s1594_s4 + $0x78] sm:$0xff] }
 0x117   :  { %318 = vrot.lane.b32.xlu0 %v317_v8, %s1081_s0 }
 0x189   :  { %v319_v9 = vpop.permute.xlu0 %318 }
 0x18a   :  { %v320_v10 = vadd.f32 %v319_v9, %v317_v8  ;;  %v397_v8 = vld [vmem:[%s1594_s4 + $0x28] sm:$0xff]  ;;  %v428_v9 = vld [vmem:[%s1594_s4 + $0x120] sm:$0xff] }
 0x18c   :  { %321 = vrot.lane.b32.xlu0 %v320_v10, %s1082_s1 }
 0x1fe   :  { %v322_v11 = vpop.permute.xlu0 %321 }
 0x1ff   :  { %v323_v12 = vadd.f32 %v322_v11, %v320_v10  ;;  %v1019_v10 = vpack.c.bf16 %v397_v8, %v396_v7  ;;  %v429_v11 = vld [vmem:[%s1594_s4 + $0x128] sm:$0xff]  ;;  %v438_v7 = vld [vmem:[%s1594_s4 + $0x170] sm:$0xff]  ;;  %v439_v8 = vld [vmem:[%s1594_s4 + $0x178] sm:$0xff] }
 0x201   :  { %324 = vrot.lane.b32.xlu1 %v323_v12, %s1083_s13 }
 0x273   :  { %v325_v14 = vpop.permute.xlu1 %324 }
 0x274   :  { %v326_v15 = vadd.f32 %v325_v14, %v323_v12  ;;  %v1049_v12 = vpack.c.bf16 %v429_v11, %v428_v9  ;;  %v414_v14 = vld [vmem:[%s1594_s4 + $0xb0] sm:$0xff]  ;;  %v1069_v9 = vpack.c.bf16 %v439_v8, %v438_v7 }
 0x276   :  { %327 = vrot.lane.b32.xlu1 %v326_v15, %s1084_s14  ;;  %1050 = vmatprep.subr.bf16.mxu1 %v1049_v12 }
 0x277   :  { %1052 = vmatpush3.bf16.msra.mxu1 %v1049_v12 }
 0x2e8   :  { %v328_v17 = vpop.permute.xlu1 %327 }
 0x2e9   :  { %v329_v19 = vadd.f32 %v328_v17, %v326_v15  ;;  %v415_v15 = vld [vmem:[%s1594_s4 + $0xb8] sm:$0xff] }
 0x2ea   :  { %v1021_v17 = vpack.c.bf16 %v415_v15, %v414_v14  ;;  %v95_v15 = vld [vmem:[%s1595_s2] sm:$0x1] }
 0x2eb   :  { %v330_v20 = vmul.f32 0.001953125, %v329_v19  ;;  %v398_v19 = vld [vmem:[%s1594_s4 + $0x30] sm:$0xff] }
 0x2ed   :  { %v334_v21 = vrot.slane %v330_v20, %v1358_v18  ;;  %v399_v20 = vld [vmem:[%s1594_s4 + $0x38] sm:$0xff] }
 0x2ef   :  { %v1361_v22 = vsub.f32 %v291_v46, %v334_v21  ;;  %v1363_v23 = vsub.f32 %v296_v54, %v334_v21  ;;  %v1365_v24 = vsub.f32 %v301_v59, %v334_v21  ;;  %v1367_v26 = vsub.f32 %v306_v1, %v334_v21  ;;  %v409_v46 = vld [vmem:[%s1594_s4 + $0x88] sm:$0xff]  ;;  %v410_v59 = vld [vmem:[%s1594_s4 + $0x90] sm:$0xff] }
 0x2f0   :  { %v1009_v48 = vpack.c.bf16 %v409_v46, %v408_v45  ;;  %v1011_v54 = vpack.c.bf16 %v393_v50, %v392_v47  ;;  %v1013_v61 = vpack.c.bf16 %v411_v60, %v410_v59  ;;  %v1015_v1 = vpack.c.bf16 %v395_v63, %v394_v62  ;;  %v430_v21 = vld [vmem:[%s1594_s4 + $0x130] sm:$0xff]  ;;  %v419_v45 = vld [vmem:[%s1594_s4 + $0xd8] sm:$0xff]  ;;  %v404_v59 = vld [vmem:[%s1594_s4 + $0x60] sm:$0xff] }
 0x2f1   :  { %v339_v27 = vmul.f32 %v1361_v22, %v1361_v22  ;;  %v340_v28 = vmul.f32 %v1363_v23, %v1363_v23  ;;  %v341_v30 = vmul.f32 %v1365_v24, %v1365_v24  ;;  %v342_v32 = vmul.f32 %v1367_v26, %v1367_v26  ;;  %v402_v47 = vld [vmem:[%s1594_s4 + $0x50] sm:$0xff]  ;;  %v405_v60 = vld [vmem:[%s1594_s4 + $0x68] sm:$0xff] }
 0x2f2   :  { %1010 = vmatprep.subr.bf16.mxu0 %v1009_v48  ;;  %v403_v48 = vld [vmem:[%s1594_s4 + $0x58] sm:$0xff]  ;;  %v434_v50 = vld [vmem:[%s1594_s4 + $0x150] sm:$0xff]  ;;  %v1035_v62 = vpack.c.bf16 %v405_v60, %v404_v59  ;;  %v437_v63 = vld [vmem:[%s1594_s4 + $0x168] sm:$0xff] }
 0x2f3   :  { %v343_v31 = vadd.f32 %v340_v28, %v339_v27  ;;  %1012 = vmatpush3.bf16.msra.mxu0 %v1011_v54  ;;  %v1023_v27 = vpack.c.bf16 %v399_v20, %v398_v19  ;;  %v431_v28 = vld [vmem:[%s1594_s4 + $0x138] sm:$0xff]  ;;  %v1031_v52 = vpack.c.bf16 %v403_v48, %v402_v47  ;;  %v420_v54 = vld [vmem:[%s1594_s4 + $0xe0] sm:$0xff] }
 0x2f4   :  { %1014 = vmatprep.subr.bf16.mxu0 %v1013_v61  ;;  %v436_v61 = vld [vmem:[%s1594_s4 + $0x160] sm:$0xff] }
 0x2f5   :  { %v344_v33 = vadd.f32 %v343_v31, %v341_v30  ;;  %v1053_v31 = vpack.c.bf16 %v431_v28, %v430_v21  ;;  %v1065_v2 = vpack.c.bf16 %v437_v63, %v436_v61  ;;  %v735_v21 = vld [vmem:[%s1596_s3] ss:$0 sm:$0xff] }
 0x2f7   :  { %v345_v34 = vadd.f32 %v344_v33, %v342_v32  ;;  %1016 = vmatpush3.bf16.msra.mxu0 %v1015_v1  ;;  %v416_v33 = vld [vmem:[%s1594_s4 + $0xc0] sm:$0xff]  ;;  %1054 = vmatprep.subr.bf16.mxu1 %v1053_v31  ;;  %v423_v1 = vld [vmem:[%s1594_s4 + $0xf8] sm:$0xff] }
 0x2f8   :  { %1018 = vmatprep.subr.bf16.mxu0 %v1017_v6  ;;  %1056 = vmatpush3.bf16.msra.mxu1 %v1053_v31  ;;  %v1037_v3 = vpack.c.bf16 %v423_v1, %v422_v0  ;;  %v1039_v6 = vpack.c.bf16 %v407_v5, %v406_v4 }
 0x2f9   :  { %v346_v35 = vrot.slane %v345_v34, 4 }
 0x2fb   :  { %v347_v37 = vadd.f32 %v346_v35, %v345_v34  ;;  %1020 = vmatpush3.bf16.msra.mxu0 %v1019_v10  ;;  %v417_v34 = vld [vmem:[%s1594_s4 + $0xc8] sm:$0xff] }
 0x2fc   :  { %1022 = vmatprep.subr.bf16.mxu0 %v1021_v17  ;;  %v1025_v35 = vpack.c.bf16 %v417_v34, %v416_v33 }
 0x2fd   :  { %v348_v39 = vrot.slane %v347_v37, 2 }
 0x2ff   :  { %v349_v40 = vadd.f32 %v348_v39, %v347_v37  ;;  %1024 = vmatpush3.bf16.msra.mxu0 %v1023_v27  ;;  %v400_v37 = vld [vmem:[%s1594_s4 + $0x40] sm:$0xff]  ;;  %v401_v39 = vld [vmem:[%s1594_s4 + $0x48] sm:$0xff] }
 0x300   :  { %1026 = vmatprep.subr.bf16.mxu0 %v1025_v35 }
 0x301   :  { %v350_v41 = vrot.slane %v349_v40, 1 }
 0x303   :  { %v351_v42 = vadd.f32 %v350_v41, %v349_v40  ;;  %v432_v40 = vld [vmem:[%s1594_s4 + $0x140] sm:$0xff]  ;;  %v1027_v41 = vpack.c.bf16 %v401_v39, %v400_v37 }
 0x305   :  { %352 = vrot.lane.b32.xlu0 %v351_v42, %s1081_s0  ;;  %1028 = vmatpush3.bf16.msra.mxu0 %v1027_v41 }
 0x377   :  { %v353_v43 = vpop.permute.xlu0 %352 }
 0x378   :  { %v354_v44 = vadd.f32 %v353_v43, %v351_v42  ;;  %v433_v42 = vld [vmem:[%s1594_s4 + $0x148] sm:$0xff] }
 0x379   :  { %v1057_v43 = vpack.c.bf16 %v433_v42, %v432_v40 }
 0x37a   :  { %355 = vrot.lane.b32.xlu1 %v354_v44, %s1082_s1 }
 0x37b   :  { %1058 = vmatprep.subr.bf16.mxu1 %v1057_v43 }
 0x37c   :  { %1060 = vmatpush3.bf16.msra.mxu1 %v1057_v43 }
 0x3ec   :  { %v356_v57 = vpop.permute.xlu1 %355 }
 0x3ed   :  { %v357_v58 = vadd.f32 %v356_v57, %v354_v44  ;;  %v418_v44 = vld [vmem:[%s1594_s4 + $0xd0] sm:$0xff]  ;;  %v1061_v57 = vpack.c.bf16 %v435_v53, %v434_v50 }
 0x3ee   :  { %v1029_v46 = vpack.c.bf16 %v419_v45, %v418_v44 }
 0x3ef   :  { %358 = vrot.lane.b32.xlu0 %v357_v58, %s1083_s13  ;;  %1062 = vmatprep.subr.bf16.mxu1 %v1061_v57 }
 0x3f0   :  { %1030 = vmatprep.subr.bf16.mxu0 %v1029_v46  ;;  %1064 = vmatpush3.bf16.msra.mxu1 %v1061_v57 }
 0x3f1   :  { %1032 = vmatpush3.bf16.msra.mxu0 %v1031_v52  ;;  %1066 = vmatprep.subr.bf16.mxu1 %v1065_v2 }
 0x3f4   :  { %1068 = vmatpush3.bf16.msra.mxu1 %v1065_v2 }
 0x3f5   :  { %1070 = vmatprep.subr.bf16.mxu1 %v1069_v9 }
 0x3f8   :  { %1072 = vmatpush3.bf16.msra.mxu1 %v1069_v9 }
 0x461   :  { %v359_v30 = vpop.permute.xlu0 %358 }
 0x462   :  { %v360_v32 = vadd.f32 %v359_v30, %v357_v58  ;;  %v1033_v58 = vpack.c.bf16 %v421_v56, %v420_v54 }
 0x464   :  { %361 = vrot.lane.b32.xlu1 %v360_v32, %s1084_s14  ;;  %1034 = vmatprep.subr.bf16.mxu0 %v1033_v58 }
 0x465   :  { %1036 = vmatpush3.bf16.msra.mxu0 %v1035_v62 }
 0x466   :  { %1038 = vmatprep.subr.bf16.mxu0 %v1037_v3 }
 0x469   :  { %1040 = vmatpush3.bf16.msra.mxu0 %v1039_v6 }
 0x4d6   :  { %v362_v10 = vpop.permute.xlu1 %361 }
 0x4d7   :  { %v363_v11 = vadd.f32 %v362_v10, %v360_v32 }
 0x4d9   :  { %v364_v12 = vmul.f32 0.001953125, %v363_v11 }
 0x4db   :  { %v365_v14 = vadd.f32 1e-05, %v364_v12 }
 0x4dd   :  { %1077 = vrsqrt.f32 %v365_v14 }
 0x4e7   :  { %v1078_v17 = vpop.eup %1077 }
 0x4e8   :  { %v367_v19 = vmul.f32 %v1078_v17, %v95_v15 }
 0x4ea   :  { %v372_v20 = vrot.slane %v367_v19, %v1358_v18 }
 0x4ec   :  { %v374_v27 = vmul.f32 %v372_v20, %v1361_v22  ;;  %v376_v28 = vmul.f32 %v372_v20, %v1365_v24  ;;  %v377_v30 = vmul.f32 %v372_v20, %v1367_v26  ;;  %v375_v31 = vmul.f32 %v372_v20, %v1363_v23 }
 0x4ee   :  { %v384_v32 = vadd.f32 %v735_v21, %v374_v27  ;;  %v386_v33 = vadd.f32 %v735_v21, %v376_v28  ;;  %v387_v34 = vadd.f32 %v735_v21, %v377_v30  ;;  %v385_v35 = vadd.f32 %v735_v21, %v375_v31 }
 0x4f0   :  { %v388_v37 = vmax.f32 %v384_v32, 0.0  ;;  %v390_v39 = vmax.f32 %v386_v33, 0.0  ;;  %v391_v40 = vmax.f32 %v387_v34, 0.0  ;;  %v389_v41 = vmax.f32 %v385_v35, 0.0 }
 0x4f2   :  { %v442_v42 = vrot.slane %v388_v37, 7  ;;  %530 = vmatprep.mubr.f32.mxu0 %v388_v37  ;;  %v445_v43 = vrot.slane %v391_v40, 7  ;;  %v454_v44 = vrot.slane %v388_v37, 1  ;;  %v455_v45 = vrot.slane %v389_v41, 1 }
 0x4f3   :  { %v456_v22 = vrot.slane %v390_v39, 1  ;;  %v457_v46 = vrot.slane %v391_v40, 1  ;;  %v443_v26 = vrot.slane %v389_v41, 7  ;;  %v444_v52 = vrot.slane %v390_v39, 7 }
 0x4f4   :  { %v449_v24 = vsel %vm101_vm1, %v445_v43, %v442_v42  ;;  %v460_v23 = vsel %vm122_vm0, %v454_v44, %v455_v45 }
 0x4f5   :  { %736 = vmatmul.mubr.msk.f32.vlgmr.msra.gmra.mrb[8].mxu0 %vm1307_vm2, %v449_v24  ;;  %939 = vmatprep.mubr.f32.mxu1 %v460_v23  ;;  %v459_v47 = vsel %vm122_vm0, %v455_v45, %v456_v22  ;;  %v458_v48 = vsel %vm122_vm0, %v456_v22, %v457_v46  ;;  %v448_v50 = vsel %vm101_vm1, %v442_v42, %v443_v26 }
 0x4f6   :  { %535 = vmatprep.mubr.f32.mxu0 %v389_v41  ;;  %940 = vmatmul.mubr.msk.f32.vlgmr.msra.gmra.mrb[4].mxu1 %vm1315_vm3, %v459_v47  ;;  %v461_v25 = vsel %vm122_vm0, %v457_v46, %v454_v44  ;;  %v447_v29 = vsel %vm101_vm1, %v443_v26, %v444_v52  ;;  %v446_v53 = vsel %vm101_vm1, %v444_v52, %v445_v43 }
 0x4f7   :  { %942 = vmatprep.mubr.f32.mxu1 %v458_v48 }
 0x4f9   :  { %536 = vmatmul.mubr.f32.gmra.mrb[10].mxu0 %v448_v50 }
 0x4fa   :  { %540 = vmatprep.mubr.f32.mxu0 %v390_v39  ;;  %943 = vmatmul.mubr.msk.f32.gmra.mrb[6].mxu1 %vm1331_vm4, %v461_v25 }
 0x4fd   :  { %737 = vmatmul.mubr.msk.f32.gmra.mrb[12].mxu0 %vm1340_vm5, %v447_v29 }
 0x4fe   :  { %545 = vmatprep.mubr.f32.mxu0 %v391_v40 }
 0x501   :  { %546 = vmatmul.mubr.f32.gmra.mrb[14].mxu0 %v446_v53 }
 0x5c8   :  { %v837_v54 = vpop.f32.mrb[8].mxu0 }
 0x5c9   :  { %v838_v56 = vpop.f32.mrb[9].mxu0  ;;  %v941_v57 = vpop.f32.mrb[4].mxu1 }
 0x5ca   :  { %v839_v58 = vadd.f32 %v838_v56, %v837_v54  ;;  %v617_v59 = vpop.f32.mrb[5].mxu1 }
 0x5cc   :  { %v618_v60 = vadd.f32 %v839_v58, %v617_v59  ;;  %v840_v61 = vpop.f32.mrb[10].mxu0 }
 0x5cd   :  { %v841_v36 = vpop.f32.mrb[11].mxu0  ;;  %v944_v62 = vpop.f32.mrb[6].mxu1 }
 0x5ce   :  { %v842_v63 = vadd.f32 %v841_v36, %v840_v61  ;;  %v627_v0 = vpop.f32.mrb[7].mxu1  ;;  %v440_v36 = vld [vmem:[%s1597_s5] sm:$0x1] }
 0x5d0   :  { %v623_v1 = vadd.f32 %v941_v57, %v842_v63  ;;  %v843_v2 = vpop.f32.mrb[12].mxu0 }
 0x5d1   :  { %v844_v38 = vpop.f32.mrb[13].mxu0 }
 0x5d2   :  { %v845_v3 = vadd.f32 %v844_v38, %v843_v2  ;;  %v636_v6 = vadd.f32 %v623_v1, %v618_v60 }
 0x5d4   :  { %v628_v4 = vadd.f32 %v845_v3, %v627_v0  ;;  %v846_v5 = vpop.f32.mrb[14].mxu0 }
 0x5d5   :  { %v847_v49 = vpop.f32.mrb[15].mxu0 }
 0x5d6   :  { %v848_v7 = vadd.f32 %v847_v49, %v846_v5  ;;  %v637_v8 = vadd.f32 %v636_v6, %v628_v4 }
 0x5d8   :  { %v633_v9 = vadd.f32 %v944_v62, %v848_v7 }
 0x5da   :  { %v638_v10 = vadd.f32 %v637_v8, %v633_v9 }
 0x5dc   :  { %v639_v11 = vrot.slane %v638_v10, 4 }
 0x5de   :  { %v640_v12 = vadd.f32 %v639_v11, %v638_v10 }
 0x5e0   :  { %v641_v14 = vrot.slane %v640_v12, 2 }
 0x5e2   :  { %v642_v15 = vadd.f32 %v641_v14, %v640_v12 }
 0x5e4   :  { %v643_v17 = vrot.slane %v642_v15, 1 }
 0x5e6   :  { %v644_v19 = vadd.f32 %v643_v17, %v642_v15 }
 0x5e8   :  { %645 = vrot.lane.b32.xlu0 %v644_v19, %s1081_s0 }
 0x65a   :  { %v646_v20 = vpop.permute.xlu0 %645 }
 0x65b   :  { %v647_v21 = vadd.f32 %v646_v20, %v644_v19 }
 0x65d   :  { %648 = vrot.lane.b32.xlu1 %v647_v21, %s1082_s1 }
 0x6cf   :  { %v649_v27 = vpop.permute.xlu1 %648 }
 0x6d0   :  { %v650_v28 = vadd.f32 %v649_v27, %v647_v21 }
 0x6d2   :  { %651 = vrot.lane.b32.xlu0 %v650_v28, %s1083_s13 }
 0x744   :  { %v652_v30 = vpop.permute.xlu0 %651 }
 0x745   :  { %v653_v31 = vadd.f32 %v652_v30, %v650_v28 }
 0x747   :  { %654 = vrot.lane.b32.xlu1 %v653_v31, %s1084_s14 }
 0x7b9   :  { %v655_v32 = vpop.permute.xlu1 %654 }
 0x7ba   :  { %v656_v33 = vadd.f32 %v655_v32, %v653_v31 }
 0x7bc   :  { %v657_v34 = vmul.f32 0.001953125, %v656_v33 }
 0x7be   :  { %v661_v35 = vrot.slane %v657_v34, %v1358_v18 }
 0x7c0   :  { %v662_v37 = vsub.f32 %v618_v60, %v661_v35  ;;  %v663_v39 = vsub.f32 %v623_v1, %v661_v35  ;;  %v664_v40 = vsub.f32 %v628_v4, %v661_v35  ;;  %v665_v41 = vsub.f32 %v633_v9, %v661_v35  ;;  %v740_v1 = vld [vmem:[%s1598_s6] ss:$0 sm:$0xff] }
 0x7c2   :  { %v666_v42 = vmul.f32 %v662_v37, %v662_v37  ;;  %v667_v43 = vmul.f32 %v663_v39, %v663_v39  ;;  %v668_v44 = vmul.f32 %v664_v40, %v664_v40  ;;  %v669_v22 = vmul.f32 %v665_v41, %v665_v41 }
 0x7c4   :  { %v670_v45 = vadd.f32 %v667_v43, %v666_v42 }
 0x7c6   :  { %v671_v46 = vadd.f32 %v670_v45, %v668_v44 }
 0x7c8   :  { %v672_v24 = vadd.f32 %v671_v46, %v669_v22 }
 0x7ca   :  { %v673_v23 = vrot.slane %v672_v24, 4 }
 0x7cc   :  { %v674_v26 = vadd.f32 %v673_v23, %v672_v24 }
 0x7ce   :  { %v675_v47 = vrot.slane %v674_v26, 2 }
 0x7d0   :  { %v676_v48 = vadd.f32 %v675_v47, %v674_v26 }
 0x7d2   :  { %v677_v50 = vrot.slane %v676_v48, 1 }
 0x7d4   :  { %v678_v52 = vadd.f32 %v677_v50, %v676_v48 }
 0x7d6   :  { %679 = vrot.lane.b32.xlu0 %v678_v52, %s1081_s0 }
 0x848   :  { %v680_v25 = vpop.permute.xlu0 %679 }
 0x849   :  { %v681_v29 = vadd.f32 %v680_v25, %v678_v52 }
 0x84b   :  { %682 = vrot.lane.b32.xlu1 %v681_v29, %s1082_s1 }
 0x8bd   :  { %v683_v53 = vpop.permute.xlu1 %682 }
 0x8be   :  { %v684_v54 = vadd.f32 %v683_v53, %v681_v29 }
 0x8c0   :  { %685 = vrot.lane.b32.xlu0 %v684_v54, %s1083_s13 }
 0x932   :  { %v686_v56 = vpop.permute.xlu0 %685 }
 0x933   :  { %v687_v57 = vadd.f32 %v686_v56, %v684_v54 }
 0x935   :  { %688 = vrot.lane.b32.xlu1 %v687_v57, %s1084_s14 }
 0x9a7   :  { %v689_v58 = vpop.permute.xlu1 %688 }
 0x9a8   :  { %v690_v59 = vadd.f32 %v689_v58, %v687_v57 }
 0x9aa   :  { %v691_v60 = vmul.f32 0.001953125, %v690_v59 }
 0x9ac   :  { %v692_v61 = vadd.f32 1e-05, %v691_v60 }
 0x9ae   :  { %1079 = vrsqrt.f32 %v692_v61 }
 0x9b8   :  { %v1080_v62 = vpop.eup %1079 }
 0x9b9   :  { %v694_v63 = vmul.f32 %v1080_v62, %v440_v36 }
 0x9bb   :  { %v699_v0 = vrot.slane %v694_v63, %v1358_v18 }
 0x9bd   :  { %v701_v2 = vmul.f32 %v699_v0, %v662_v37  ;;  %v702_v38 = vmul.f32 %v699_v0, %v663_v39  ;;  %v703_v3 = vmul.f32 %v699_v0, %v664_v40  ;;  %v704_v4 = vmul.f32 %v699_v0, %v665_v41 }
 0x9bf   :  { %v711_v5 = vadd.f32 %v740_v1, %v701_v2  ;;  %v712_v49 = vadd.f32 %v740_v1, %v702_v38  ;;  %v713_v6 = vadd.f32 %v740_v1, %v703_v3  ;;  %v714_v7 = vadd.f32 %v740_v1, %v704_v4 }
 0x9c1   :  { %v715_v8 = vmax.f32 %v711_v5, 0.0  ;;  %v716_v9 = vmax.f32 %v712_v49, 0.0  ;;  %v717_v10 = vmax.f32 %v713_v6, 0.0  ;;  %v718_v11 = vmax.f32 %v714_v7, 0.0 }
 0x9c3   :  { %v719_v12 = vadd.f32 %v715_v8, %v1232_v51  ;;  %v720_v18 = vadd.f32 %v716_v9, %v1243_v55  ;;  %v721_v14 = vadd.f32 %v717_v10, %v1298_v16  ;;  %v722_v15 = vadd.f32 %v718_v11, %v1292_v13 }
 0x9c5   :  { %723 = vst [vmem:[%s1599_s7] sm:$0xff] %v719_v12  ;;  %724 = vst [vmem:[%s1599_s7 + $0x8] sm:$0xff] %v720_v18 }
 0x9c6   :  { %725 = vst [vmem:[%s1599_s7 + $0x10] sm:$0xff] %v721_v14  ;;  %726 = vst [vmem:[%s1599_s7 + $0x18] sm:$0xff] %v722_v15 }

</bundles_post_ra>
